<compile_context>
chip_gen: v7x
topology: tpu7x:2x2x1
jax: 0.10.0
libtpu: 0.0.40
codegen_flags: <defaults>
</compile_context>

<pallas_src>
import math

import jax
import jax.numpy as jnp
from jax.experimental import pallas as pl
from jax.experimental.pallas import tpu as pltpu


def _reorg_kernel(x_ref, o_ref, cm0_ref, cm1_ref):
    """Space-to-depth (factor 2) for a slab of TB input planes.

    x_ref : (TB*H, W)       input slab, rows ordered (plane, row)
    o_ref : (TB, 4*H2, W2)  output block; sub-channel j = 2*hi + wi occupies
                            rows [j*H2, (j+1)*H2) of axis 1
    cm*_ref: (W, TB*H2)     VMEM scratch: transposed row-parity slab
    """
    tb = o_ref.shape[0]
    h2 = o_ref.shape[1] // 4
    w2 = o_ref.shape[2]
    n_half_rows = tb * h2
    col_major = (cm0_ref, cm1_ref)

    for hi in range(2):
        cm = col_major[hi]
        # Rows with parity hi across ALL planes at once (H even => global row
        # parity == in-plane row parity); one slab-level XLU transpose so the
        # wi split below becomes a cheap sublane-strided ref load.
        cm[...] = jnp.transpose(x_ref[pl.ds(hi, n_half_rows, 2), :])   # (W, TB*H2)
        for wi in range(2):
            # Columns with parity wi, transposed back to row-major.
            d = jnp.transpose(cm[pl.ds(wi, w2, 2), :])                 # (TB*H2, W2)
            o_ref[:, pl.ds((2 * hi + wi) * h2, h2), :] = d.reshape(tb, h2, w2)


def _round_up(x, m):
    return (x + m - 1) // m * m


def _step_vmem_bytes(tb, h, w, itemsize):
    """Approximate padded VMEM footprint of one grid step (double-buffered)."""
    h2, w2 = h // 2, w // 2
    in_blk = _round_up(tb * h, 8) * _round_up(w, 128) * itemsize
    out_blk = tb * _round_up(4 * h2, 8) * _round_up(w2, 128) * itemsize
    scratch = 2 * _round_up(w, 8) * _round_up(tb * h2, 128) * itemsize
    return 2 * in_blk + 2 * out_blk + scratch


def _choose_tb(nc, h, w, itemsize, *, target_in_bytes, vmem_budget_bytes):
    """Planes per grid step: byte-targeted, block-shape legal, megacore aware."""
    # (tb*h) must be a multiple of 8 (sublane tile) unless the block spans the
    # whole plane axis; for even h this means tb must be a multiple of m.
    m = 8 // math.gcd(h, 8)
    if nc <= m:
        return nc                       # single full-extent block
    tb = m
    t = m
    while t <= nc:
        in_blk = _round_up(t * h, 8) * _round_up(w, 128) * itemsize
        if (in_blk > target_in_bytes
                or _step_vmem_bytes(t, h, w, itemsize) > vmem_budget_bytes):
            break
        tb = t
        t += m
    # Keep >= 4 grid steps when possible (2 TensorCores on v7x x >=2 steps
    # each, so the auto-pipeline actually overlaps DMA and compute).
    if nc >= 4 * m:
        tb = min(tb, max(m, (pl.cdiv(nc, 4) // m) * m))
    # Prefer an exact divisor of nc close to tb (avoids a ragged last block).
    for cand in range(tb, 0, -1):
        if nc % cand == 0 and (cand % m == 0 or cand == nc) and 2 * cand >= tb:
            return cand
    return tb


def reorg(x, *, target_block_bytes=2 << 20, vmem_budget_bytes=8 << 20):
    """out = Reorg()(x) for NCHW input x with even H and W."""
    n, c, h, w = x.shape
    assert h % 2 == 0 and w % 2 == 0, "Reorg requires even spatial dims"
    h2, w2 = h // 2, w // 2
    nc = n * c
    itemsize = jnp.dtype(x.dtype).itemsize

    tb = _choose_tb(nc, h, w, itemsize,
                    target_in_bytes=target_block_bytes,
                    vmem_budget_bytes=vmem_budget_bytes)
    grid = (pl.cdiv(nc, tb),)

    x2 = x.reshape(nc * h, w)           # free row-major view (same as torch .view)

    out3 = pl.pallas_call(
        _reorg_kernel,
        out_shape=jax.ShapeDtypeStruct((nc, 4 * h2, w2), x.dtype),
        grid=grid,
        in_specs=[pl.BlockSpec((tb * h, w), lambda i: (i, 0))],
        out_specs=pl.BlockSpec((tb, 4 * h2, w2), lambda i: (i, 0, 0)),
        scratch_shapes=[
            pltpu.VMEM((w, tb * h2), x.dtype),   # transposed hi=0 slab
            pltpu.VMEM((w, tb * h2), x.dtype),   # transposed hi=1 slab
        ],
        compiler_params=pltpu.CompilerParams(
            dimension_semantics=("parallel",),
            vmem_limit_bytes=32 << 20,
        ),
    )(x2)

    # Free row-major view back to NCHW: channel index = 4*c + (2*hi + wi),
    # exactly matching the PyTorch permute+view ordering.
    return out3.reshape(n, c * 4, h2, w2)


def _reorg_reference(x):
    n, c, h, w = x.shape
    y = x.reshape(n, c, h // 2, 2, w // 2, 2)
    y = jnp.transpose(y, (0, 1, 3, 5, 2, 4))
    return y.reshape(n, c * 4, h // 2, w // 2)


if __name__ == "__main__":
    key = jax.random.PRNGKey(0)
    x = jax.random.normal(key, (2, 4, 16, 16), dtype=jnp.float32)

    out = jax.block_until_ready(reorg(x))
    ref = _reorg_reference(x)
    assert out.shape == (2, 16, 8, 8), f"bad shape {out.shape}"
    assert bool(jnp.array_equal(out, ref)), "mismatch vs reference"

    # Non-square spatial dims, single-grid-step path.
    x2 = jax.random.normal(jax.random.PRNGKey(0), (1, 3, 16, 12), dtype=jnp.float32)
    out2 = jax.block_until_ready(reorg(x2))
    assert out2.shape == (1, 12, 8, 6), f"bad shape {out2.shape}"
    assert bool(jnp.array_equal(out2, _reorg_reference(x2))), "mismatch vs reference (case 2)"

    print("KERNEL_OK")
</pallas_src>

<mosaic_0001>
module attributes {stable_mosaic.version = 11 : i64} {
  func.func @_reorg_kernel(%arg0: i32, %arg1: memref<32x16xf32, #tpu.memory_space<vmem>>, %arg2: memref<2x32x8xf32, #tpu.memory_space<vmem>>, %arg3: memref<16x16xf32, #tpu.memory_space<vmem>>, %arg4: memref<16x16xf32, #tpu.memory_space<vmem>>) attributes {dimension_semantics = [#tpu.dimension_semantics<parallel>], iteration_bounds = array<i64: 4>, scalar_prefetch = 0 : i64, scratch_operands = 2 : i64, tpu.core_type = #tpu.core_type<tc>, window_params = [{transform_indices = @transform_0, window_bounds = array<i64: 32, 16>}, {transform_indices = @transform_1, window_bounds = array<i64: 2, 32, 8>}]} {
    %c0 = arith.constant 0 : index
    %c0_0 = arith.constant 0 : index
    %0 = tpu.strided_load %arg1[%c0, %c0_0] {strides = array<i32: 2, 1>} : memref<32x16xf32, #tpu.memory_space<vmem>>, vector<16x16xf32>
    %1 = tpu.transpose %0, [1, 0] : vector<16x16xf32> -> vector<16x16xf32>
    %c0_1 = arith.constant 0 : index
    %c0_2 = arith.constant 0 : index
    %2 = vector.load %arg3[%c0_1, %c0_2] : memref<16x16xf32, #tpu.memory_space<vmem>>, vector<16x16xf32>
    tpu.vector_store %arg3[%c0_1, %c0_2], %1 {strides = array<i32>} : memref<16x16xf32, #tpu.memory_space<vmem>>, vector<16x16xf32>,
    %c0_3 = arith.constant 0 : index
    %c0_4 = arith.constant 0 : index
    %3 = tpu.strided_load %arg3[%c0_3, %c0_4] {strides = array<i32: 2, 1>} : memref<16x16xf32, #tpu.memory_space<vmem>>, vector<8x16xf32>
    %4 = tpu.transpose %3, [1, 0] : vector<8x16xf32> -> vector<16x8xf32>
    %5 = vector.shape_cast %4 : vector<16x8xf32> to vector<2x8x8xf32>
    %c0_5 = arith.constant 0 : index
    %c0_6 = arith.constant 0 : index
    %c0_7 = arith.constant 0 : index
    %6 = vector.load %arg2[%c0_5, %c0_6, %c0_7] : memref<2x32x8xf32, #tpu.memory_space<vmem>>, vector<2x8x8xf32>
    tpu.vector_store %arg2[%c0_5, %c0_6, %c0_7], %5 {strides = array<i32>} : memref<2x32x8xf32, #tpu.memory_space<vmem>>, vector<2x8x8xf32>,
    %c1 = arith.constant 1 : index
    %c0_8 = arith.constant 0 : index
    %7 = tpu.strided_load %arg3[%c1, %c0_8] {strides = array<i32: 2, 1>} : memref<16x16xf32, #tpu.memory_space<vmem>>, vector<8x16xf32>
    %8 = tpu.transpose %7, [1, 0] : vector<8x16xf32> -> vector<16x8xf32>
    %9 = vector.shape_cast %8 : vector<16x8xf32> to vector<2x8x8xf32>
    %c0_9 = arith.constant 0 : index
    %c8 = arith.constant 8 : index
    %c0_10 = arith.constant 0 : index
    %10 = vector.load %arg2[%c0_9, %c8, %c0_10] : memref<2x32x8xf32, #tpu.memory_space<vmem>>, vector<2x8x8xf32>
    tpu.vector_store %arg2[%c0_9, %c8, %c0_10], %9 {strides = array<i32>} : memref<2x32x8xf32, #tpu.memory_space<vmem>>, vector<2x8x8xf32>,
    %c1_11 = arith.constant 1 : index
    %c0_12 = arith.constant 0 : index
    %11 = tpu.strided_load %arg1[%c1_11, %c0_12] {strides = array<i32: 2, 1>} : memref<32x16xf32, #tpu.memory_space<vmem>>, vector<16x16xf32>
    %12 = tpu.transpose %11, [1, 0] : vector<16x16xf32> -> vector<16x16xf32>
    %c0_13 = arith.constant 0 : index
    %c0_14 = arith.constant 0 : index
    %13 = vector.load %arg4[%c0_13, %c0_14] : memref<16x16xf32, #tpu.memory_space<vmem>>, vector<16x16xf32>
    tpu.vector_store %arg4[%c0_13, %c0_14], %12 {strides = array<i32>} : memref<16x16xf32, #tpu.memory_space<vmem>>, vector<16x16xf32>,
    %c0_15 = arith.constant 0 : index
    %c0_16 = arith.constant 0 : index
    %14 = tpu.strided_load %arg4[%c0_15, %c0_16] {strides = array<i32: 2, 1>} : memref<16x16xf32, #tpu.memory_space<vmem>>, vector<8x16xf32>
    %15 = tpu.transpose %14, [1, 0] : vector<8x16xf32> -> vector<16x8xf32>
    %16 = vector.shape_cast %15 : vector<16x8xf32> to vector<2x8x8xf32>
    %c0_17 = arith.constant 0 : index
    %c16 = arith.constant 16 : index
    %c0_18 = arith.constant 0 : index
    %17 = vector.load %arg2[%c0_17, %c16, %c0_18] : memref<2x32x8xf32, #tpu.memory_space<vmem>>, vector<2x8x8xf32>
    tpu.vector_store %arg2[%c0_17, %c16, %c0_18], %16 {strides = array<i32>} : memref<2x32x8xf32, #tpu.memory_space<vmem>>, vector<2x8x8xf32>,
    %c1_19 = arith.constant 1 : index
    %c0_20 = arith.constant 0 : index
    %18 = tpu.strided_load %arg4[%c1_19, %c0_20] {strides = array<i32: 2, 1>} : memref<16x16xf32, #tpu.memory_space<vmem>>, vector<8x16xf32>
    %19 = tpu.transpose %18, [1, 0] : vector<8x16xf32> -> vector<16x8xf32>
    %20 = vector.shape_cast %19 : vector<16x8xf32> to vector<2x8x8xf32>
    %c0_21 = arith.constant 0 : index
    %c24 = arith.constant 24 : index
    %c0_22 = arith.constant 0 : index
    %21 = vector.load %arg2[%c0_21, %c24, %c0_22] : memref<2x32x8xf32, #tpu.memory_space<vmem>>, vector<2x8x8xf32>
    tpu.vector_store %arg2[%c0_21, %c24, %c0_22], %20 {strides = array<i32>} : memref<2x32x8xf32, #tpu.memory_space<vmem>>, vector<2x8x8xf32>,
    return
  }
  func.func @transform_0(%arg0: i32) -> (i32, i32) {
    %c0_i32 = arith.constant 0 : i32
    %c0_i32_0 = arith.constant 0 : i32
    return %arg0, %c0_i32 : i32, i32
  }
  func.func @transform_1(%arg0: i32) -> (i32, i32, i32) {
    %c0_i32 = arith.constant 0 : i32
    %c0_i32_0 = arith.constant 0 : i32
    %c0_i32_1 = arith.constant 0 : i32
    return %arg0, %c0_i32, %c0_i32_0 : i32, i32, i32
  }
}

</mosaic_0001>

<bundles_post_ra>
// kernel: tpu_custom_call.1
= control target key start
LH: loop header
LB: loop body
LE: loop exit
PB: predicated region body
PF: predicated region fallthrough
CT: control target
= control target key end

     0   :  { %s442_s6 = smov 0   ;;  %s471_s0 = inlined_call_operand.vmem [shape: f32[128,16], index: 0, kind: input, shape index: {}]   ;;  %s472_s1 = inlined_call_operand.vmem [shape: f32[8,32,8], index: 1, kind: output, shape index: {}]  }
   0x1 LB: > { %s399_s7 = sadd.s32 4294967295, %s430_s6   ;;  %p403_p0 = scmp.ge.s32.totalorder %s430_s6, 1  ;;  %s430_s6 = sphi %s442_s6, %s11_s6  }
   0x2   : > { %p88_p1 = scmp.lt.s32.totalorder %s430_s6, 5 }
   0x4   : > { %p89_p2 = pnand %p403_p0, %p88_p1 }
   0x5   : > { %s404_s8 = sshll.u32 (!%p89_p2), %s399_s7, 2  ;;  %vm157_vm0 = vcmask (!%p89_p2), 130048   ;;  %s406_s13 = sshll.u32 (!%p89_p2), %s399_s7, 1  ;;  %vm193_vm1 = vcmask (!%p89_p2), 64512  }
   0x6   : > { %92 = sbr.rel (%p89_p2) target bundleno = 300 (0x12c), region = 24  ;;  %p110_p3 = scmp.lt.s32.totalorder (!%p89_p2), %s404_s8, 15 }
   0x7   : > { %p116_p4 = scmp.lt.s32.totalorder (!%p89_p2), %s406_s13, 7 }
   0xd   : > { %s474_s8 = smov (!%p110_p3, %s404_s8), 15  ;;  %s476_s13 = smov (!%p116_p4, %s406_s13), 7 }
   0xe   : > { %s405_s9 = sshll.u32 %s474_s8, 3  ;;  %s414_s14 = sshll.u32 %s476_s13, 5 }
   0xf   : > { %s113_s12 = scalar_lea.vmem %s471_s0, %s405_s9  ;;  %s120_s17 = scalar_lea.vmem %s472_s1, %s414_s14 }
  0x10   : > { %v122_v0 = vld [vmem:[%s113_s12] ss:$2 sm:$0xff]  ;;  %v410_v1 = vld [vmem:[%s113_s12 + $0x1] ss:$2 sm:$0xff]  ;;  %v409_v2 = vld [vmem:[%s113_s12 + $0x10] ss:$2 sm:$0xff] }
  0x11   : > { %125 = vxpose.xlu0.b32.start [1/2] (short) (narrow) %v122_v0, 16  ;;  %236 = vxpose.xlu1.b32.start [1/2] (short) (narrow) %v410_v1, 16  ;;  %v411_v3 = vld [vmem:[%s113_s12 + $0x11] ss:$2 sm:$0xff] }
  0x15   : > { %126 = vxpose.xlu0.b32.end [2/2] (short) (narrow) %v409_v2, 16  ;;  %237 = vxpose.xlu1.b32.end [2/2] (short) (narrow) %v411_v3, 16 }
  0x91   : > { %v141_v4 = vpop.trf.xlu0  ;;  %v252_v5 = vpop.trf.xlu1 }
  0x92   : > { %158 = vst.msk [vmem:[#allocation2] sm:$0xff] %vm157_vm0, %v141_v4  ;;  %268 = vst.msk [vmem:[#allocation3] sm:$0xff] %vm157_vm0, %v252_v5 }
  0x95   : > { %v142_v6 = vpop.trf.xlu0  ;;  %v253_v7 = vpop.trf.xlu1 }
  0x96   : > { %159 = vst.msk [vmem:[#allocation2 + $0x8] sm:$0xff] %vm157_vm0, %v142_v6  ;;  %269 = vst.msk [vmem:[#allocation3 + $0x8] sm:$0xff] %vm157_vm0, %v253_v7 }
  0x9d   : > { %v197_v8 = vld [vmem:[#allocation2 + $0x1] ss:$2 sm:$0xff]  ;;  %v160_v9 = vld [vmem:[#allocation2] ss:$2 sm:$0xff]  ;;  %v306_v10 = vld [vmem:[#allocation3 + $0x1] ss:$2 sm:$0xff] }
  0x9e   : > { %198 = vxpose.xlu1.b32.start.end [1/1] (short) (narrow) %v197_v8, 16  ;;  %161 = vxpose.xlu0.b32.start.end [1/1] (short) (narrow) %v160_v9, 16  ;;  %v270_v11 = vld [vmem:[#allocation3] ss:$2 sm:$0xff] }
  0xa3   : > { %307 = vxpose.xlu1.b32.start.end [1/1] (short) (narrow) %v306_v10, 16  ;;  %271 = vxpose.xlu0.b32.start.end [1/1] (short) (narrow) %v270_v11, 16 }
 0x11e   : > { %v214_v12 = vpop.trf.xlu1  ;;  %v177_v13 = vpop.trf.xlu0 }
 0x11f   : > { %230 = vst.msk [vmem:[%s120_s17 + $0x8] sm:$0xff] %vm193_vm1, %v214_v12  ;;  %194 = vst.msk [vmem:[%s120_s17] sm:$0xff] %vm193_vm1, %v177_v13 }
 0x122   : > { %v215_v14 = vpop.trf.xlu1  ;;  %v178_v15 = vpop.trf.xlu0 }
 0x123   : > { %231 = vst.msk [vmem:[%s120_s17 + $0x28] sm:$0xff] %vm193_vm1, %v215_v14  ;;  %195 = vst.msk [vmem:[%s120_s17 + $0x20] sm:$0xff] %vm193_vm1, %v178_v15 }
 0x126   : > { %v323_v16 = vpop.trf.xlu1  ;;  %v287_v17 = vpop.trf.xlu0 }
 0x127   : > { %339 = vst.msk [vmem:[%s120_s17 + $0x18] sm:$0xff] %vm193_vm1, %v323_v16  ;;  %303 = vst.msk [vmem:[%s120_s17 + $0x10] sm:$0xff] %vm193_vm1, %v287_v17 }
 0x12a   : > { %v324_v18 = vpop.trf.xlu1  ;;  %v288_v19 = vpop.trf.xlu0 }
 0x12b   : > { %340 = vst.msk [vmem:[%s120_s17 + $0x38] sm:$0xff] %vm193_vm1, %v324_v18  ;;  %304 = vst.msk [vmem:[%s120_s17 + $0x30] sm:$0xff] %vm193_vm1, %v288_v19 }
 0x12c PF: > { %s11_s6 = sadd.s32 1, %s430_s6  }
 0x12d   : > { %p8_p5 = scmp.ge.s32.totalorder %s11_s6, 6  }
 0x12f   :  { %10 = sbr.rel (!%p8_p5) target bundleno = 1 (0x1), region = 59 }

</bundles_post_ra>
